<compile_context>
chip_gen: v7x
topology: tpu7x:2x2x1
jax: 0.10.0
libtpu: 0.0.40
codegen_flags: <defaults>
</compile_context>

<pallas_src>
import jax
import jax.numpy as jnp
from jax.experimental import pallas as pl
from jax.experimental.pallas import tpu as pltpu


def _round_up(x, m):
    return (x + m - 1) // m * m


def _vmem_limit_bytes():
    """Generation-aware scoped-VMEM limit (v7x: 64 MiB phys, v5e/v6e: 128)."""
    cap = 64 * 1024 * 1024
    try:
        cap = int(pltpu.get_tpu_info().vmem_capacity_bytes)
    except Exception:  # noqa: BLE001 - fall back to the safest (v7x) size
        pass
    return max(32 * 1024 * 1024,
               min(cap - 16 * 1024 * 1024, 100 * 1024 * 1024))


# --------------------------------------------------------------------------
# Kernel 1: one-step LSTM cell (single grid point).
# --------------------------------------------------------------------------
def lstm_cell_kernel(xh_ref, c_ref, wg_ref, bg_ref,
                     hout_ref, cout_ref, hbf_ref):
    Hp = c_ref.shape[1]
    Hk = hbf_ref.shape[1]

    # Single fused gate matmul on the MXU (bf16 in, f32 accumulate).
    gates = (jnp.dot(xh_ref[...].astype(jnp.bfloat16), wg_ref[...],
                     preferred_element_type=jnp.float32)
             + bg_ref[...])

    # Each gate occupies a full Hp (=k*128) column block -> lane-aligned
    # slices, no cross-lane relayout.  Activations stay in f32 (v5e EUP).
    i_gate = jax.nn.sigmoid(gates[:, 0 * Hp:1 * Hp])
    f_gate = jax.nn.sigmoid(gates[:, 1 * Hp:2 * Hp])
    g_gate = jnp.tanh(gates[:, 2 * Hp:3 * Hp])
    o_gate = jax.nn.sigmoid(gates[:, 3 * Hp:4 * Hp])

    c_new = f_gate * c_ref[...] + i_gate * g_gate
    h_new = o_gate * jnp.tanh(c_new)

    cout_ref[...] = c_new
    hout_ref[...] = h_new
    # bf16 copy of h, truncated to the unpadded-K width, reused by the fc
    # kernel (avoids a per-vocab-tile cast and the 128-pad on K).
    hbf_ref[...] = h_new[:, :Hk].astype(jnp.bfloat16)


# --------------------------------------------------------------------------
# Kernel 2: fc_out projection, streamed over vocab tiles (parallel axis).
# --------------------------------------------------------------------------
def fc_out_kernel(h_ref, wfc_ref, bfc_ref, pred_ref):
    j = pl.program_id(0)
    # Resident f32 bias: one dynamic sublane-row read per tile, no per-step DMA.
    bias = bfc_ref[pl.ds(j, 1), :]                       # (1, tile_v)
    pred_ref[...] = (jnp.dot(h_ref[...], wfc_ref[...],
                             preferred_element_type=jnp.float32)
                     + bias)


def pack_decoder_params(params, *, tile_v=2048):
    """Fuse/pad/cast logical (PyTorch-layout-transposed) params for the kernels.

    Done once and reused across decode steps (amortizes the repack cost).
    """
    assert tile_v % 128 == 0
    emb = params["embedding"].astype(jnp.float32)        # (V, E)
    w_ih, w_hh = params["w_ih"], params["w_hh"]          # (E,4H), (H,4H)
    b_g, w_fc, b_fc = params["b_gates"], params["w_fc"], params["b_fc"]

    V, E = emb.shape
    H = w_hh.shape[0]
    Hp = _round_up(H, 128)                 # per-gate lane padding (gate slices)
    Hk = _round_up(H, 16)                  # fc contraction pad: bf16 sublane only
    tile_v = min(tile_v, _round_up(V, 128))
    Vp = _round_up(V, tile_v)

    # Fused + per-gate-padded gate weights / bias.  Zero padding keeps padded
    # gate columns at exactly 0 pre-activation -> h/c padding stays exactly 0.
    wg = jnp.zeros((E + Hp, 4 * Hp), jnp.float32)
    bg = jnp.zeros((1, 4 * Hp), jnp.float32)
    for k in range(4):
        wg = wg.at[:E, k * Hp:k * Hp + H].set(w_ih[:, k * H:(k + 1) * H])
        wg = wg.at[E:E + H, k * Hp:k * Hp + H].set(w_hh[:, k * H:(k + 1) * H])
        bg = bg.at[:, k * Hp:k * Hp + H].set(b_g[:, k * H:(k + 1) * H])

    wfc = jnp.zeros((Hk, Vp), jnp.float32).at[:H, :V].set(w_fc)
    bfc = jnp.zeros((1, Vp), jnp.float32).at[:, :V].set(b_fc)
    bfc = bfc.reshape(Vp // tile_v, tile_v)   # one resident row per vocab tile

    return {
        "embedding": emb,                      # kept f32 (gather precision)
        "w_gates": wg.astype(jnp.bfloat16),
        "b_gates": bg,
        "w_fc": wfc.astype(jnp.bfloat16),
        "b_fc": bfc,
    }


def decoder_forward(tokens, hidden, cell, packed):
    """Mirrors Decoder.forward(input, hidden, cell) in eval mode.

    tokens : (B,) int32, hidden/cell : (1, B, H) f32.
    Returns (prediction (B, V), hidden (1, B, H), cell (1, B, H)).
    """
    emb = packed["embedding"]
    wg, bg = packed["w_gates"], packed["b_gates"]
    wfc, bfc = packed["w_fc"], packed["b_fc"]

    V, E = emb.shape
    B = tokens.shape[0]
    H = hidden.shape[-1]
    Hp = bg.shape[1] // 4
    Hk = wfc.shape[0]
    Vp = wfc.shape[1]
    n_v_tiles, tile_v = bfc.shape
    assert n_v_tiles * tile_v == Vp

    # NOTE: w_fc streaming cost is batch independent -> tokens/sec scales ~
    # linearly with batch; serve with B >> 8 when the stack allows it.
    Bp = _round_up(max(B, 1), 8)

    # Glue (outside the kernel): embedding gather, dropout (identity in eval),
    # padding to lane/sublane-dense shapes.  Zero padding -> exact zeros in the
    # padded rows/cols of h/c/pred, sliced off below.
    # TODO(synk): move the embedding gather in-kernel (scalar-prefetch tokens in
    # SMEM + per-row DMA from an HBM table) to drop one XLA launch per step.
    # TODO(synk): for autoregressive multi-token decode on v5e/v6e, add a time
    # grid axis and keep w_fc resident in VMEM across tokens (size-gated on
    # v7x's 64 MiB).
    x_emb = emb[tokens]                                   # (B, E)
    xh = jnp.zeros((Bp, E + Hp), jnp.float32)
    xh = xh.at[:B, :E].set(x_emb)
    xh = xh.at[:B, E:E + H].set(hidden[0])
    c_pad = jnp.zeros((Bp, Hp), jnp.float32).at[:B, :H].set(cell[0])

    vmem_limit = _vmem_limit_bytes()

    # ---- Kernel 1: LSTM cell (tiny, single grid point) -------------------
    lstm_flops = 2 * Bp * (E + Hp) * 4 * Hp
    lstm_bytes = (xh.size * 4 + c_pad.size * 4 + wg.size * 2 + bg.size * 4
                  + 2 * Bp * Hp * 4 + Bp * Hk * 2)
    full2 = lambda i: (0, 0)

    h_p, c_p, h_bf = pl.pallas_call(
        lstm_cell_kernel,
        out_shape=(
            jax.ShapeDtypeStruct((Bp, Hp), jnp.float32),
            jax.ShapeDtypeStruct((Bp, Hp), jnp.float32),
            jax.ShapeDtypeStruct((Bp, Hk), jnp.bfloat16),
        ),
        grid_spec=pltpu.PrefetchScalarGridSpec(
            num_scalar_prefetch=0,
            grid=(1,),
            in_specs=[
                pl.BlockSpec((Bp, E + Hp), full2),        # xh
                pl.BlockSpec((Bp, Hp), full2),            # c
                pl.BlockSpec((E + Hp, 4 * Hp), full2),    # fused gate weights
                pl.BlockSpec((1, 4 * Hp), full2),         # gate bias
            ],
            out_specs=(
                pl.BlockSpec((Bp, Hp), full2),            # h_out (f32)
                pl.BlockSpec((Bp, Hp), full2),            # c_out (f32)
                pl.BlockSpec((Bp, Hk), full2),            # h (bf16, Hk wide)
            ),
        ),
        # In-place LSTM cell-state update: input c_pad aliases output c_out.
        input_output_aliases={1: 1},
        compiler_params=pltpu.CompilerParams(
            dimension_semantics=("arbitrary",),
            vmem_limit_bytes=vmem_limit,
        ),
        cost_estimate=pl.CostEstimate(
            flops=lstm_flops,
            transcendentals=5 * Bp * Hp,
            bytes_accessed=lstm_bytes),
    )(xh, c_pad, wg, bg)

    # ---- Kernel 2: vocab projection, streamed + core-parallel ------------
    fc_flops = 2 * Bp * Hk * Vp
    fc_bytes = Bp * Hk * 2 + wfc.size * 2 + bfc.size * 4 + Bp * Vp * 4

    pred_p = pl.pallas_call(
        fc_out_kernel,
        out_shape=jax.ShapeDtypeStruct((Bp, Vp), jnp.float32),
        grid_spec=pltpu.PrefetchScalarGridSpec(
            num_scalar_prefetch=0,
            grid=(n_v_tiles,),
            in_specs=[
                pl.BlockSpec((Bp, Hk), lambda j: (0, 0)),            # h (resident)
                pl.BlockSpec((Hk, tile_v), lambda j: (0, j)),        # w_fc (streamed)
                pl.BlockSpec((n_v_tiles, tile_v), lambda j: (0, 0)), # b_fc (resident)
            ],
            out_specs=pl.BlockSpec((Bp, tile_v), lambda j: (0, j)),  # pred (streamed)
        ),
        compiler_params=pltpu.CompilerParams(
            # No cross-step scratch dependence -> vocab axis can be split
            # across TensorCores (up to ~2x on v7x; no effect on v5e/v6e).
            dimension_semantics=("parallel",),
            vmem_limit_bytes=vmem_limit,
        ),
        cost_estimate=pl.CostEstimate(
            flops=fc_flops, transcendentals=0, bytes_accessed=fc_bytes),
    )(h_bf, wfc, bfc)

    pred = pred_p[:B, :V]
    h_out = h_p[:B, :H][None, :, :]
    c_out = c_p[:B, :H][None, :, :]
    return pred, h_out, c_out


def make_params(key, output_dim, emb_dim, hid_dim):
    """Logical params (PyTorch init, weights stored transposed)."""
    ks = jax.random.split(key, 7)
    k = 1.0 / jnp.sqrt(hid_dim)
    return {
        "embedding": jax.random.normal(ks[0], (output_dim, emb_dim),
                                       dtype=jnp.float32),
        "w_ih": jax.random.uniform(ks[1], (emb_dim, 4 * hid_dim),
                                   minval=-k, maxval=k, dtype=jnp.float32),
        "w_hh": jax.random.uniform(ks[2], (hid_dim, 4 * hid_dim),
                                   minval=-k, maxval=k, dtype=jnp.float32),
        "b_gates": (jax.random.uniform(ks[3], (1, 4 * hid_dim),
                                       minval=-k, maxval=k, dtype=jnp.float32)
                    + jax.random.uniform(ks[4], (1, 4 * hid_dim),
                                         minval=-k, maxval=k,
                                         dtype=jnp.float32)),
        "w_fc": jax.random.uniform(ks[5], (hid_dim, output_dim),
                                   minval=-k, maxval=k, dtype=jnp.float32),
        "b_fc": jax.random.uniform(ks[6], (1, output_dim),
                                   minval=-k, maxval=k, dtype=jnp.float32),
    }


def reference_forward(tokens, hidden, cell, params):
    """Pure-JAX reference mirroring the kernel math (bf16 weights, f32 acc)."""
    H = hidden.shape[-1]
    x = params["embedding"][tokens]
    h, c = hidden[0], cell[0]
    xh = jnp.concatenate([x, h], axis=1).astype(jnp.bfloat16)
    wg = jnp.concatenate([params["w_ih"], params["w_hh"]],
                         axis=0).astype(jnp.bfloat16)
    gates = (jnp.dot(xh, wg, preferred_element_type=jnp.float32)
             + params["b_gates"])
    i = jax.nn.sigmoid(gates[:, 0 * H:1 * H])
    f = jax.nn.sigmoid(gates[:, 1 * H:2 * H])
    g = jnp.tanh(gates[:, 2 * H:3 * H])
    o = jax.nn.sigmoid(gates[:, 3 * H:4 * H])
    c_new = f * c + i * g
    h_new = o * jnp.tanh(c_new)
    pred = (jnp.dot(h_new.astype(jnp.bfloat16),
                    params["w_fc"].astype(jnp.bfloat16),
                    preferred_element_type=jnp.float32)
            + params["b_fc"])
    return pred, h_new[None], c_new[None]


if __name__ == "__main__":
    output_dim = 1024  # vocab size (4 vocab tiles at tile_v=256)
    emb_dim = 32
    hid_dim = 32
    batch = 2
    tile_v = 256       # small demo tile; real serving uses the 2048 default

    key = jax.random.PRNGKey(0)
    k_params, k_tok, k_h, k_c = jax.random.split(key, 4)

    params = make_params(k_params, output_dim, emb_dim, hid_dim)
    packed = pack_decoder_params(params, tile_v=tile_v)

    tokens = jax.random.randint(k_tok, (batch,), 0, output_dim, dtype=jnp.int32)
    hidden = jax.random.normal(k_h, (1, batch, hid_dim), dtype=jnp.float32)
    cell = jax.random.normal(k_c, (1, batch, hid_dim), dtype=jnp.float32)

    fwd = jax.jit(decoder_forward)
    pred, h_out, c_out = fwd(tokens, hidden, cell, packed)
    jax.block_until_ready((pred, h_out, c_out))

    pred_r, h_r, c_r = reference_forward(tokens, hidden, cell, params)
    assert pred.shape == (batch, output_dim)
    assert h_out.shape == (1, batch, hid_dim)
    assert c_out.shape == (1, batch, hid_dim)
    assert jnp.allclose(pred, pred_r, atol=1e-3, rtol=1e-3)
    assert jnp.allclose(h_out, h_r, atol=1e-3, rtol=1e-3)
    assert jnp.allclose(c_out, c_r, atol=1e-3, rtol=1e-3)

    print("KERNEL_OK")
</pallas_src>

<mosaic_0001>
module attributes {stable_mosaic.version = 11 : i64} {
  func.func @lstm_cell_kernel(%arg0: i32, %arg1: memref<8x160xf32, #tpu.memory_space<vmem>>, %arg2: memref<8x128xf32, #tpu.memory_space<vmem>>, %arg3: memref<160x512xbf16, #tpu.memory_space<vmem>>, %arg4: memref<1x512xf32, #tpu.memory_space<vmem>>, %arg5: memref<8x128xf32, #tpu.memory_space<vmem>>, %arg6: memref<8x128xf32, #tpu.memory_space<vmem>>, %arg7: memref<8x32xbf16, #tpu.memory_space<vmem>>) attributes {dimension_semantics = [#tpu.dimension_semantics<arbitrary>], iteration_bounds = array<i64: 1>, scalar_prefetch = 0 : i64, scratch_operands = 0 : i64, tpu.core_type = #tpu.core_type<tc>, window_params = [{pipeline_mode = #tpu.pipeline_mode<synchronous>, transform_indices = @transform_0, window_bounds = array<i64: 8, 160>}, {pipeline_mode = #tpu.pipeline_mode<synchronous>, transform_indices = @transform_1, window_bounds = array<i64: 8, 128>}, {pipeline_mode = #tpu.pipeline_mode<synchronous>, transform_indices = @transform_2, window_bounds = array<i64: 160, 512>}, {pipeline_mode = #tpu.pipeline_mode<synchronous>, transform_indices = @transform_3, window_bounds = array<i64: 1, 512>}, {pipeline_mode = #tpu.pipeline_mode<synchronous>, transform_indices = @transform_4, window_bounds = array<i64: 8, 128>}, {pipeline_mode = #tpu.pipeline_mode<synchronous>, transform_indices = @transform_5, window_bounds = array<i64: 8, 128>}, {pipeline_mode = #tpu.pipeline_mode<synchronous>, transform_indices = @transform_6, window_bounds = array<i64: 8, 32>}]} {
    %c0 = arith.constant 0 : index
    %c0_0 = arith.constant 0 : index
    %0 = vector.load %arg1[%c0, %c0_0] : memref<8x160xf32, #tpu.memory_space<vmem>>, vector<8x160xf32>
    %1 = arith.truncf %0 : vector<8x160xf32> to vector<8x160xbf16>
    %c0_1 = arith.constant 0 : index
    %c0_2 = arith.constant 0 : index
    %2 = vector.load %arg3[%c0_1, %c0_2] : memref<160x512xbf16, #tpu.memory_space<vmem>>, vector<160x512xbf16>
    %cst = arith.constant dense<0.000000e+00> : vector<8x512xf32>
    %3 = tpu.matmul %1, %2, %cst {dimension_numbers = #tpu.dot_dimension_numbers<[1], [0], [0], [1], [0, 0, 1, 1], [], []>} : vector<8x160xbf16>, vector<160x512xbf16>, vector<8x512xf32> -> vector<8x512xf32>
    %c0_3 = arith.constant 0 : index
    %c0_4 = arith.constant 0 : index
    %4 = vector.load %arg4[%c0_3, %c0_4] : memref<1x512xf32, #tpu.memory_space<vmem>>, vector<1x512xf32>
    %5 = vector.broadcast %4 : vector<1x512xf32> to vector<8x512xf32>
    %6 = arith.addf %3, %5 : vector<8x512xf32>
    %7 = vector.extract_strided_slice %6 {offsets = [0, 0], sizes = [8, 128], strides = [1, 1]} : vector<8x512xf32> to vector<8x128xf32>
    %8 = arith.negf %7 : vector<8x128xf32>
    %9 = math.exp %8 : vector<8x128xf32>
    %cst_5 = arith.constant 1.000000e+00 : f32
    %10 = vector.broadcast %cst_5 : f32 to vector<8x128xf32>
    %11 = arith.addf %10, %9 : vector<8x128xf32>
    %12 = arith.divf %10, %11 : vector<8x128xf32>
    %13 = vector.extract_strided_slice %6 {offsets = [0, 128], sizes = [8, 128], strides = [1, 1]} : vector<8x512xf32> to vector<8x128xf32>
    %14 = arith.negf %13 : vector<8x128xf32>
    %15 = math.exp %14 : vector<8x128xf32>
    %cst_6 = arith.constant 1.000000e+00 : f32
    %16 = vector.broadcast %cst_6 : f32 to vector<8x128xf32>
    %17 = arith.addf %16, %15 : vector<8x128xf32>
    %18 = arith.divf %16, %17 : vector<8x128xf32>
    %19 = vector.extract_strided_slice %6 {offsets = [0, 256], sizes = [8, 128], strides = [1, 1]} : vector<8x512xf32> to vector<8x128xf32>
    %20 = math.tanh %19 : vector<8x128xf32>
    %21 = vector.extract_strided_slice %6 {offsets = [0, 384], sizes = [8, 128], strides = [1, 1]} : vector<8x512xf32> to vector<8x128xf32>
    %22 = arith.negf %21 : vector<8x128xf32>
    %23 = math.exp %22 : vector<8x128xf32>
    %cst_7 = arith.constant 1.000000e+00 : f32
    %24 = vector.broadcast %cst_7 : f32 to vector<8x128xf32>
    %25 = arith.addf %24, %23 : vector<8x128xf32>
    %26 = arith.divf %24, %25 : vector<8x128xf32>
    %c0_8 = arith.constant 0 : index
    %c0_9 = arith.constant 0 : index
    %27 = vector.load %arg2[%c0_8, %c0_9] : memref<8x128xf32, #tpu.memory_space<vmem>>, vector<8x128xf32>
    %28 = arith.mulf %18, %27 : vector<8x128xf32>
    %29 = arith.mulf %12, %20 : vector<8x128xf32>
    %30 = arith.addf %28, %29 : vector<8x128xf32>
    %31 = math.tanh %30 : vector<8x128xf32>
    %32 = arith.mulf %26, %31 : vector<8x128xf32>
    %c0_10 = arith.constant 0 : index
    %c0_11 = arith.constant 0 : index
    %33 = vector.load %arg6[%c0_10, %c0_11] : memref<8x128xf32, #tpu.memory_space<vmem>>, vector<8x128xf32>
    tpu.vector_store %arg6[%c0_10, %c0_11], %30 {strides = array<i32>} : memref<8x128xf32, #tpu.memory_space<vmem>>, vector<8x128xf32>,
    %c0_12 = arith.constant 0 : index
    %c0_13 = arith.constant 0 : index
    %34 = vector.load %arg5[%c0_12, %c0_13] : memref<8x128xf32, #tpu.memory_space<vmem>>, vector<8x128xf32>
    tpu.vector_store %arg5[%c0_12, %c0_13], %32 {strides = array<i32>} : memref<8x128xf32, #tpu.memory_space<vmem>>, vector<8x128xf32>,
    %35 = vector.extract_strided_slice %32 {offsets = [0, 0], sizes = [8, 32], strides = [1, 1]} : vector<8x128xf32> to vector<8x32xf32>
    %36 = arith.truncf %35 : vector<8x32xf32> to vector<8x32xbf16>
    %c0_14 = arith.constant 0 : index
    %c0_15 = arith.constant 0 : index
    %37 = vector.load %arg7[%c0_14, %c0_15] : memref<8x32xbf16, #tpu.memory_space<vmem>>, vector<8x32xbf16>
    tpu.vector_store %arg7[%c0_14, %c0_15], %36 {strides = array<i32>} : memref<8x32xbf16, #tpu.memory_space<vmem>>, vector<8x32xbf16>,
    return
  }
  func.func @transform_0(%arg0: i32) -> (i32, i32) {
    %c0_i32 = arith.constant 0 : i32
    %c0_i32_0 = arith.constant 0 : i32
    %c0_i32_1 = arith.constant 0 : i32
    return %c0_i32, %c0_i32_0 : i32, i32
  }
  func.func @transform_1(%arg0: i32) -> (i32, i32) {
    %c0_i32 = arith.constant 0 : i32
    %c0_i32_0 = arith.constant 0 : i32
    %c0_i32_1 = arith.constant 0 : i32
    return %c0_i32, %c0_i32_0 : i32, i32
  }
  func.func @transform_2(%arg0: i32) -> (i32, i32) {
    %c0_i32 = arith.constant 0 : i32
    %c0_i32_0 = arith.constant 0 : i32
    %c0_i32_1 = arith.constant 0 : i32
    return %c0_i32, %c0_i32_0 : i32, i32
  }
  func.func @transform_3(%arg0: i32) -> (i32, i32) {
    %c0_i32 = arith.constant 0 : i32
    %c0_i32_0 = arith.constant 0 : i32
    %c0_i32_1 = arith.constant 0 : i32
    return %c0_i32, %c0_i32_0 : i32, i32
  }
  func.func @transform_4(%arg0: i32) -> (i32, i32) {
    %c0_i32 = arith.constant 0 : i32
    %c0_i32_0 = arith.constant 0 : i32
    %c0_i32_1 = arith.constant 0 : i32
    return %c0_i32, %c0_i32_0 : i32, i32
  }
  func.func @transform_5(%arg0: i32) -> (i32, i32) {
    %c0_i32 = arith.constant 0 : i32
    %c0_i32_0 = arith.constant 0 : i32
    %c0_i32_1 = arith.constant 0 : i32
    return %c0_i32, %c0_i32_0 : i32, i32
  }
  func.func @transform_6(%arg0: i32) -> (i32, i32) {
    %c0_i32 = arith.constant 0 : i32
    %c0_i32_0 = arith.constant 0 : i32
    %c0_i32_1 = arith.constant 0 : i32
    return %c0_i32, %c0_i32_0 : i32, i32
  }
}

module attributes {stable_mosaic.version = 11 : i64} {
  func.func @fc_out_kernel(%arg0: i32, %arg1: memref<8x32xbf16, #tpu.memory_space<vmem>>, %arg2: memref<32x256xbf16, #tpu.memory_space<vmem>>, %arg3: memref<4x256xf32, #tpu.memory_space<vmem>>, %arg4: memref<8x256xf32, #tpu.memory_space<vmem>>) attributes {dimension_semantics = [#tpu.dimension_semantics<parallel>], iteration_bounds = array<i64: 4>, scalar_prefetch = 0 : i64, scratch_operands = 0 : i64, tpu.core_type = #tpu.core_type<tc>, window_params = [{pipeline_mode = #tpu.pipeline_mode<synchronous>, transform_indices = @transform_0, window_bounds = array<i64: 8, 32>}, {transform_indices = @transform_1, window_bounds = array<i64: 32, 256>}, {pipeline_mode = #tpu.pipeline_mode<synchronous>, transform_indices = @transform_2, window_bounds = array<i64: 4, 256>}, {transform_indices = @transform_3, window_bounds = array<i64: 8, 256>}]} {
    %0 = arith.index_cast %arg0 : i32 to index
    %c0 = arith.constant 0 : index
    %1 = vector.load %arg3[%0, %c0] : memref<4x256xf32, #tpu.memory_space<vmem>>, vector<1x256xf32>
    %c0_0 = arith.constant 0 : index
    %c0_1 = arith.constant 0 : index
    %2 = vector.load %arg1[%c0_0, %c0_1] : memref<8x32xbf16, #tpu.memory_space<vmem>>, vector<8x32xbf16>
    %c0_2 = arith.constant 0 : index
    %c0_3 = arith.constant 0 : index
    %3 = vector.load %arg2[%c0_2, %c0_3] : memref<32x256xbf16, #tpu.memory_space<vmem>>, vector<32x256xbf16>
    %cst = arith.constant dense<0.000000e+00> : vector<8x256xf32>
    %4 = tpu.matmul %2, %3, %cst {dimension_numbers = #tpu.dot_dimension_numbers<[1], [0], [0], [1], [0, 0, 1, 1], [], []>} : vector<8x32xbf16>, vector<32x256xbf16>, vector<8x256xf32> -> vector<8x256xf32>
    %5 = vector.broadcast %1 : vector<1x256xf32> to vector<8x256xf32>
    %6 = arith.addf %4, %5 : vector<8x256xf32>
    %c0_4 = arith.constant 0 : index
    %c0_5 = arith.constant 0 : index
    %7 = vector.load %arg4[%c0_4, %c0_5] : memref<8x256xf32, #tpu.memory_space<vmem>>, vector<8x256xf32>
    tpu.vector_store %arg4[%c0_4, %c0_5], %6 {strides = array<i32>} : memref<8x256xf32, #tpu.memory_space<vmem>>, vector<8x256xf32>,
    return
  }
  func.func @transform_0(%arg0: i32) -> (i32, i32) {
    %c0_i32 = arith.constant 0 : i32
    %c0_i32_0 = arith.constant 0 : i32
    %c0_i32_1 = arith.constant 0 : i32
    return %c0_i32, %c0_i32_0 : i32, i32
  }
  func.func @transform_1(%arg0: i32) -> (i32, i32) {
    %c0_i32 = arith.constant 0 : i32
    %c0_i32_0 = arith.constant 0 : i32
    return %c0_i32, %arg0 : i32, i32
  }
  func.func @transform_2(%arg0: i32) -> (i32, i32) {
    %c0_i32 = arith.constant 0 : i32
    %c0_i32_0 = arith.constant 0 : i32
    %c0_i32_1 = arith.constant 0 : i32
    return %c0_i32, %c0_i32_0 : i32, i32
  }
  func.func @transform_3(%arg0: i32) -> (i32, i32) {
    %c0_i32 = arith.constant 0 : i32
    %c0_i32_0 = arith.constant 0 : i32
    return %c0_i32, %arg0 : i32, i32
  }
}

</mosaic_0001>

<bundles_post_ra>
// kernel: decoder_forward.3
= control target key start
LH: loop header
LB: loop body
LE: loop exit
PB: predicated region body
PF: predicated region fallthrough
CT: control target
= control target key end

     0   :  { %s476_s12 = smov 0   ;;  %s478_s13 = smov 0   ;;  %s537_s0 = inlined_call_operand.vmem [shape: bf16[8,32], index: 0, kind: input, shape index: {}]   ;;  %s538_s1 = inlined_call_operand.vmem [shape: bf16[32,1024], index: 1, kind: input, shape index: {}]   ;;  %s539_s2 = inlined_call_operand.vmem [shape: f32[4,256], index: 2, kind: input, shape index: {}]   ;;  %s540_s3 = inlined_call_operand.vmem [shape: f32[8,1024], index: 3, kind: output, shape index: {}]  }
   0x1   :  { %s480_s14 = smov 0  }
   0x2 LB: > { %s492_s15 = sadd.s32 4294967295, %s453_s14   ;;  %s495_s16 = sadd.s32 1, %s453_s14   ;;  %s453_s14 = sphi %s480_s14, %s543_s14   ;;  %s449_s13 = sphi %s478_s13, %s542_s13   ;;  %s445_s12 = sphi %s476_s12, %s541_s12  }
   0x3   : > { %s38_s17 = ssub.s32 %s453_s14, %s495_s16  ;;  %s41_s18 = sadd.s32 1, %s449_s13 }
   0x4   : > { %p39_p0 = scmp.eq.s32.totalorder %s38_s17, 0  ;;  %p48_p1 = scmp.ne.s32.totalorder %s449_s13, %s445_s12 }
   0x5   : > { %p49_p2 = scmp.eq.s32.totalorder %s453_s14, 0  ;;  %p381_p4 = scmp.ge.s32.totalorder %s453_s14, 4 }
   0x6   : > { %s504_s19 = scalar_select %p39_p0, %s449_s13, %s41_s18  }
   0x7   : > { %p50_p3 = por %p49_p2, %p48_p1  ;;  %127 = sbr.rel (%p381_p4) target bundleno = 22 (0x16), region = 24 }
   0xe   : > { %130 = sbr.rel (!%p50_p3) target bundleno = 22 (0x16), region = 28  ;;  %s132_s20 = sand.u32 (%p50_p3), 1, %s449_s13  }
   0xf   : > { %s398_s21 = sshll.u32 (%p50_p3), %s453_s14, 3  ;;  %s382_s22 = sshll.u32 (%p50_p3), %s132_s20, 5 }
  0x10   : > { %s137_s25 = scalar_lea.vmem (%p50_p3), %s538_s1, %s398_s21  ;;  %s134_s26 = scalar_lea.vmem (%p50_p3), [#allocation2], %s382_s22 }
  0x11   : > { %v171_v0 = vld [vmem:[%s137_s25] sm:$0xff] (%p50_p3) }
  0x12   : > { %v173_v1 = vld [vmem:[%s137_s25 + $0x20] sm:$0xff] (%p50_p3)  ;;  %172 = vst [vmem:[%s134_s26] sm:$0xff] (%p50_p3), %v171_v0 }
  0x13   : > { %v175_v2 = vld [vmem:[%s137_s25 + $0x40] sm:$0xff] (%p50_p3)  ;;  %174 = vst [vmem:[%s134_s26 + $0x8] sm:$0xff] (%p50_p3), %v173_v1 }
  0x14   : > { %176 = vst [vmem:[%s134_s26 + $0x10] sm:$0xff] (%p50_p3), %v175_v2  ;;  %v177_v3 = vld [vmem:[%s137_s25 + $0x60] sm:$0xff] (%p50_p3) }
  0x15   : > { %178 = vst [vmem:[%s134_s26 + $0x18] sm:$0xff] %v177_v3 }
  0x16 PF: > { %p385_p5 = scmp.ge.s32.totalorder %s453_s14, 1  ;;  %p183_p6 = scmp.lt.s32.totalorder %s453_s14, 5 }
  0x18   : > { %p184_p7 = pnand %p385_p5, %p183_p6 }
  0x19   : > { %s190_s27 = sand.u32 (!%p184_p7), 1, %s445_s12   ;;  %v455_v4 = vmov (!%p184_p7), 0   ;;  %v230_v9 = vld [vmem:[%s537_s0] sm:$0xf] (!%p184_p7)  ;;  %vm266_vm0 = vcmask (!%p184_p7), 261120   ;;  %s221_s5 = sshra.s32 (!%p184_p7), %s492_s15, 2  ;;  %v236_v10 = vlaneseq (!%p184_p7) }
  0x1a   : > { %187 = sbr.rel (%p184_p7) target bundleno = 253 (0xfd), region = 66  ;;  %s386_s28 = sshll.u32 (!%p184_p7), %s190_s27, 5  ;;  %302 = vmatprep.mubr.bf16.mxu0 (!%p184_p7), %v455_v4 }
  0x1b   : > { %s192_s29 = scalar_lea.vmem (!%p184_p7), [#allocation2], %s386_s28  ;;  %s224_s6 = sand.u32 (!%p184_p7), 3, %s492_s15  ;;  %v237_v11 = vshrl.u32 (!%p184_p7), %v236_v10, 7 }
  0x1c   : > { %v425_v5 = vld [vmem:[%s192_s29 + $0x4] ss:$8 sps:$4 sm:$0xff] (!%p184_p7)   ;;  %v427_v6 = vld [vmem:[%s192_s29] ss:$8 sps:$4 sm:$0xff] (!%p184_p7)   ;;  %v428_v7 = vld [vmem:[%s192_s29 + $0x14] ss:$8 sps:$4 sm:$0xff] (!%p184_p7)  }
  0x1d   : > { %270 = vmatprep.subr.bf16.mxu0 (!%p184_p7), %v425_v5  ;;  %v430_v8 = vld [vmem:[%s192_s29 + $0x10] ss:$8 sps:$4 sm:$0xff] (!%p184_p7)   ;;  %s399_s7 = sshll.u32 (!%p184_p7), %s221_s5, 3  ;;  %s387_s8 = sshll.u32 (!%p184_p7), %s492_s15, 1  ;;  %v238_v12 = vsub.s32 (!%p184_p7), 0, %v237_v11  ;;  %v242_v14 = vsub.s32 (!%p184_p7), 1, %v237_v11 }
  0x1e   : > { %271 = vmatpush1.bf16.msra.mxu0 (!%p184_p7), %v427_v6  ;;  %s227_s9 = sadd.s32 (!%p184_p7), %s399_s7, %s224_s6  ;;  %p215_p8 = scmp.lt.s32.totalorder (!%p184_p7), %s387_s8, 7 }
  0x1f   : > { %272 = vmatprep.subr.bf16.mxu0 (!%p184_p7), %v428_v7  ;;  %s228_s12 = scalar_lea.vmem (!%p184_p7), %s539_s2, %s227_s9 }
  0x20   : > { %v229_v13 = vld [vmem:[%s228_s12] ss:$4 sm:$0x3] (!%p184_p7) }
  0x21   : > { %s545_s8 = smov (!%p215_p8, %s387_s8), 7  ;;  %v239_v15 = vrot.slane %v229_v13, %v238_v12  ;;  %v243_v16 = vrot.slane %v229_v13, %v242_v14 }
  0x22   : > { %273 = vmatpush1.bf16.msra.mxu0 %v430_v8  ;;  %s388_s14 = sshll.u32 %s545_s8, 3 }
  0x23   : > { %s218_s20 = scalar_lea.vmem %s540_s3, %s388_s14 }
  0x25   : > { %395 = vmatmul.mubr.msk.bf16.vlgmr.msra.gmra.mrb[0].mxu0 %vm266_vm0, %v230_v9 }
  0xf8   : > { %v304_v17 = vpop.f32.mrb[0].mxu0 }
  0xf9   : > { %v305_v18 = vadd.f32 %v304_v17, %v239_v15  ;;  %v306_v19 = vpop.f32.mrb[1].mxu0 }
  0xfa   : > { %v307_v20 = vadd.f32 %v306_v19, %v243_v16  ;;  %v308_v21 = vpop.f32.mrb[2].mxu0 }
  0xfb   : > { %311 = vst [vmem:[%s218_s20] sm:$0xff] %v305_v18  ;;  %v309_v22 = vpop.f32.mrb[3].mxu0 }
  0xfc   : > { %312 = vst [vmem:[%s218_s20 + $0x8] sm:$0xff] %v307_v20 }
  0xfd PF: > { %p10_p9 = scmp.ge.s32.totalorder %s495_s16, 6   ;;  %s541_s12 = smov %s449_s13 }
  0xfe   : > { %s542_s13 = smov %s504_s19  ;;  %s543_s14 = smov %s495_s16 }
  0xff   :  { %12 = sbr.rel (!%p10_p9) target bundleno = 2 (0x2), region = 106 }

// kernel: decoder_forward.2
= control target key start
LH: loop header
LB: loop body
LE: loop exit
PB: predicated region body
PF: predicated region fallthrough
CT: control target
= control target key end

     0   :  { %vm287_vm0 = vcmask 261120   ;;  %v67_v44 = vlaneseq  ;;  %vm401_vm1 = vcmask 257024   ;;  %s712_s2 = inlined_call_operand.vmem [shape: bf16[160,512], index: 2, kind: input, shape index: {}]   ;;  %s713_s0 = inlined_call_operand.vmem [shape: f32[8,160], index: 0, kind: input, shape index: {}]   ;;  %s714_s3 = inlined_call_operand.vmem [shape: f32[1,512], index: 3, kind: input, shape index: {}]   ;;  %s715_s1 = inlined_call_operand.vmem [shape: f32[8,128], index: 1, kind: input, shape index: {}, may-alias: {1,5}]   ;;  %s716_s5 = inlined_call_operand.vmem [shape: f32[8,128], index: 5, kind: output, shape index: {1}, may-alias: {1,5}]   ;;  %s717_s4 = inlined_call_operand.vmem [shape: f32[8,128], index: 4, kind: output, shape index: {0}]   ;;  %s718_s6 = inlined_call_operand.vmem [shape: bf16[8,32], index: 6, kind: output, shape index: {2}]  }
   0x1   :  { %v460_v0 = vld [vmem:[%s712_s2 + $0x4] ss:$16 sps:$4 sm:$0xff]   ;;  %v462_v1 = vld [vmem:[%s712_s2] ss:$16 sps:$4 sm:$0xff]   ;;  %v471_v5 = vld [vmem:[%s712_s2 + $0xc] ss:$16 sps:$4 sm:$0xff]  }
   0x2   :  { %291 = vmatprep.subr.bf16.mxu0 %v460_v0  ;;  %v463_v2 = vld [vmem:[%s712_s2 + $0x24] ss:$16 sps:$4 sm:$0xff]   ;;  %v465_v3 = vld [vmem:[%s712_s2 + $0x20] ss:$16 sps:$4 sm:$0xff]   ;;  %v474_v6 = vld [vmem:[%s712_s2 + $0x8] ss:$16 sps:$4 sm:$0xff]   ;;  %332 = vmatprep.subr.bf16.mxu1 %v471_v5 }
   0x3   :  { %292 = vmatpush1.bf16.msra.mxu0 %v462_v1  ;;  %v466_v4 = vld [vmem:[%s712_s2 + $0x44] ss:$16 sps:$4 sm:$0xff]   ;;  %v468_v7 = vld [vmem:[%s712_s2 + $0x40] ss:$16 sps:$4 sm:$0xff]   ;;  %333 = vmatpush1.bf16.msra.mxu1 %v474_v6  ;;  %v477_v9 = vld [vmem:[%s712_s2 + $0x2c] ss:$16 sps:$4 sm:$0xff]  }
   0x4   :  { %293 = vmatprep.subr.bf16.mxu0 %v463_v2  ;;  %v469_v8 = vld [vmem:[%s712_s2 + $0x64] ss:$16 sps:$4 sm:$0xff]   ;;  %v480_v10 = vld [vmem:[%s712_s2 + $0x28] ss:$16 sps:$4 sm:$0xff]   ;;  %334 = vmatprep.subr.bf16.mxu1 %v477_v9  ;;  %v473_v11 = vld [vmem:[%s712_s2 + $0x60] ss:$16 sps:$4 sm:$0xff]  }
   0x5   :  { %v475_v12 = vld [vmem:[%s712_s2 + $0x84] ss:$16 sps:$4 sm:$0xff]   ;;  %v483_v13 = vld [vmem:[%s712_s2 + $0x4c] ss:$16 sps:$4 sm:$0xff]   ;;  %v486_v14 = vld [vmem:[%s712_s2 + $0x48] ss:$16 sps:$4 sm:$0xff]  }
   0x6   :  { %v489_v15 = vld [vmem:[%s712_s2 + $0x6c] ss:$16 sps:$4 sm:$0xff]   ;;  %v479_v16 = vld [vmem:[%s712_s2 + $0x80] ss:$16 sps:$4 sm:$0xff]   ;;  %v481_v17 = vld [vmem:[%s712_s2 + $0xa4] ss:$16 sps:$4 sm:$0xff]  }
   0x7   :  { %294 = vmatpush1.bf16.msra.mxu0 %v465_v3  ;;  %335 = vmatpush1.bf16.msra.mxu1 %v480_v10  ;;  %v492_v18 = vld [vmem:[%s712_s2 + $0x68] ss:$16 sps:$4 sm:$0xff]   ;;  %v495_v19 = vld [vmem:[%s712_s2 + $0x8c] ss:$16 sps:$4 sm:$0xff]   ;;  %v485_v20 = vld [vmem:[%s712_s2 + $0xa0] ss:$16 sps:$4 sm:$0xff]  }
   0x8   :  { %295 = vmatprep.subr.bf16.mxu0 %v466_v4  ;;  %336 = vmatprep.subr.bf16.mxu1 %v483_v13  ;;  %v487_v21 = vld [vmem:[%s712_s2 + $0xc4] ss:$16 sps:$4 sm:$0xff]   ;;  %v498_v22 = vld [vmem:[%s712_s2 + $0x88] ss:$16 sps:$4 sm:$0xff]   ;;  %v501_v23 = vld [vmem:[%s712_s2 + $0xac] ss:$16 sps:$4 sm:$0xff]  }
   0x9   :  { %v491_v24 = vld [vmem:[%s712_s2 + $0xc0] ss:$16 sps:$4 sm:$0xff]   ;;  %v22_v25 = vld [vmem:[%s713_s0 + $0x8] sm:$0xff]  ;;  %v493_v26 = vld [vmem:[%s712_s2 + $0xe4] ss:$16 sps:$4 sm:$0xff]   ;;  %v68_v45 = vshrl.u32 %v67_v44, 7 }
   0xa   :  { %v504_v27 = vld [vmem:[%s712_s2 + $0xa8] ss:$16 sps:$4 sm:$0xff]   ;;  %v24_v28 = vpack.c.bf16 %v22_v25, %v22_v25  ;;  %v507_v29 = vld [vmem:[%s712_s2 + $0xcc] ss:$16 sps:$4 sm:$0xff]   ;;  %v497_v30 = vld [vmem:[%s712_s2 + $0xe0] ss:$16 sps:$4 sm:$0xff]  }
   0xb   :  { %296 = vmatpush1.bf16.msra.mxu0 %v468_v7  ;;  %337 = vmatpush1.bf16.msra.mxu1 %v486_v14  ;;  %v499_v31 = vld [vmem:[%s712_s2 + $0x104] ss:$16 sps:$4 sm:$0xff]   ;;  %v510_v32 = vld [vmem:[%s712_s2 + $0xc8] ss:$16 sps:$4 sm:$0xff]   ;;  %v511_v33 = vld [vmem:[%s712_s2 + $0xec] ss:$16 sps:$4 sm:$0xff]  }
   0xc   :  { %297 = vmatprep.subr.bf16.mxu0 %v469_v8  ;;  %338 = vmatprep.subr.bf16.mxu1 %v489_v15  ;;  %v503_v34 = vld [vmem:[%s712_s2 + $0x100] ss:$16 sps:$4 sm:$0xff]   ;;  %v505_v35 = vld [vmem:[%s712_s2 + $0x124] ss:$16 sps:$4 sm:$0xff]   ;;  %v513_v36 = vld [vmem:[%s712_s2 + $0xe8] ss:$16 sps:$4 sm:$0xff]  }
   0xd   :  { %455 = vmatprep.mubr.msk.bf16.mxu0 %vm287_vm0, %v24_v28  ;;  %456 = vmatprep.mubr.msk.bf16.mxu1 %vm287_vm0, %v24_v28  ;;  %v514_v37 = vld [vmem:[%s712_s2 + $0x10c] ss:$16 sps:$4 sm:$0xff]   ;;  %v509_v38 = vld [vmem:[%s712_s2 + $0x120] ss:$16 sps:$4 sm:$0xff]   ;;  %v516_v40 = vld [vmem:[%s712_s2 + $0x108] ss:$16 sps:$4 sm:$0xff]  }
   0xe   :  { %v21_v39 = vld [vmem:[%s713_s0] sm:$0xff]  ;;  %v517_v41 = vld [vmem:[%s712_s2 + $0x12c] ss:$16 sps:$4 sm:$0xff]   ;;  %v519_v43 = vld [vmem:[%s712_s2 + $0x128] ss:$16 sps:$4 sm:$0xff]   ;;  %v69_v46 = vsub.s32 0, %v68_v45 }
   0xf   :  { %298 = vmatpush1.bf16.msra.mxu0 %v473_v11  ;;  %339 = vmatpush1.bf16.msra.mxu1 %v492_v18  ;;  %v23_v42 = vpack.c.bf16 %v21_v39, %v21_v39  ;;  %v65_v47 = vld [vmem:[%s714_s3] sm:$0xf]  ;;  %v73_v48 = vsub.s32 1, %v68_v45  ;;  %v81_v51 = vsub.s32 3, %v68_v45  ;;  %v77_v61 = vsub.s32 2, %v68_v45 }
  0x10   :  { %299 = vmatprep.subr.bf16.mxu0 %v475_v12  ;;  %340 = vmatprep.subr.bf16.mxu1 %v495_v19  ;;  %v70_v49 = vrot.slane %v65_v47, %v69_v46  ;;  %v392_v12 = vld [vmem:[%s715_s1] sm:$0xff] }
  0x11   :  { %v74_v50 = vrot.slane %v65_v47, %v73_v48  ;;  %v82_v59 = vrot.slane %v65_v47, %v81_v51  ;;  %v78_v2 = vrot.slane %v65_v47, %v77_v61 }
  0x13   :  { %300 = vmatpush1.bf16.msra.mxu0 %v479_v16  ;;  %341 = vmatpush1.bf16.msra.mxu1 %v498_v22 }
  0x14   :  { %301 = vmatprep.subr.bf16.mxu0 %v481_v17  ;;  %342 = vmatprep.subr.bf16.mxu1 %v501_v23 }
  0x17   :  { %302 = vmatpush1.bf16.msra.mxu0 %v485_v20  ;;  %343 = vmatpush1.bf16.msra.mxu1 %v504_v27 }
  0x18   :  { %303 = vmatprep.subr.bf16.mxu0 %v487_v21  ;;  %344 = vmatprep.subr.bf16.mxu1 %v507_v29 }
  0x1b   :  { %304 = vmatpush1.bf16.msra.mxu0 %v491_v24  ;;  %345 = vmatpush1.bf16.msra.mxu1 %v510_v32 }
  0x1c   :  { %305 = vmatprep.subr.bf16.mxu0 %v493_v26  ;;  %346 = vmatprep.subr.bf16.mxu1 %v511_v33 }
  0x1f   :  { %306 = vmatpush1.bf16.msra.mxu0 %v497_v30  ;;  %347 = vmatpush1.bf16.msra.mxu1 %v513_v36 }
  0x20   :  { %307 = vmatprep.subr.bf16.mxu0 %v499_v31  ;;  %348 = vmatprep.subr.bf16.mxu1 %v514_v37 }
  0x23   :  { %308 = vmatpush1.bf16.msra.mxu0 %v503_v34  ;;  %349 = vmatpush1.bf16.msra.mxu1 %v516_v40 }
  0x24   :  { %309 = vmatprep.subr.bf16.mxu0 %v505_v35  ;;  %350 = vmatprep.subr.bf16.mxu1 %v517_v41 }
  0x27   :  { %310 = vmatpush1.bf16.msra.mxu0 %v509_v38  ;;  %351 = vmatpush1.bf16.msra.mxu1 %v519_v43 }
  0x2a   :  { %324 = vmatmul.mubr.bf16.vlgmr.msra.gmra.mrb[0].mxu0 %v23_v42  ;;  %365 = vmatmul.mubr.bf16.vlgmr.msra.gmra.mrb[0].mxu1 %v23_v42 }
  0xfd   :  { %v325_v52 = vpop.f32.mrb[0].mxu0  ;;  %v366_v62 = vpop.f32.mrb[0].mxu1 }
  0xfe   :  { %v326_v53 = vadd.f32 %v325_v52, %v70_v49  ;;  %v327_v54 = vpop.f32.mrb[1].mxu0  ;;  %v368_v63 = vpop.f32.mrb[1].mxu1  ;;  %v367_v5 = vadd.f32 %v366_v62, %v78_v2 }
  0xff   :  { %v328_v55 = vadd.f32 %v327_v54, %v74_v50  ;;  %v329_v56 = vpop.f32.mrb[2].mxu0  ;;  %v369_v0 = vadd.f32 %v368_v63, %v82_v59  ;;  %v370_v1 = vpop.f32.mrb[2].mxu1 }
 0x100   :  { %v457_v57 = vmul.f32 -1.442695, %v326_v53  ;;  %v330_v58 = vpop.f32.mrb[3].mxu0  ;;  %v371_v3 = vpop.f32.mrb[3].mxu1 }
 0x101   :  { %v458_v60 = vmul.f32 -1.442695, %v328_v55  ;;  %v459_v4 = vmul.f32 -1.442695, %v369_v0 }
 0x102   :  { %520 = vpow2.f32 %v457_v57 }
 0x103   :  { %522 = vpow2.f32 %v458_v60 }
 0x104   :  { %524 = vpow2.f32 %v459_v4 }
 0x105   :  { %526 = vtanh.f32 %v367_v5 }
 0x10c   :  { %v521_v6 = vpop.eup %520 }
 0x10d   :  { %v523_v7 = vpop.eup %522  ;;  %v376_v8 = vadd.f32 1.0, %v521_v6 }
 0x10e   :  { %v382_v9 = vadd.f32 1.0, %v523_v7  ;;  %v525_v10 = vpop.eup %524 }
 0x10f   :  { %528 = vrcp.f32 %v376_v8  ;;  %v527_v11 = vpop.eup %526  ;;  %v389_v14 = vadd.f32 1.0, %v525_v10 }
 0x110   :  { %530 = vrcp.f32 %v382_v9 }
 0x111   :  { %532 = vrcp.f32 %v389_v14 }
 0x119   :  { %v529_v13 = vpop.eup %528 }
 0x11a   :  { %v531_v15 = vpop.eup %530  ;;  %v394_v16 = vmul.f32 %v529_v13, %v527_v11 }
 0x11b   :  { %v393_v17 = vmul.f32 %v531_v15, %v392_v12  ;;  %v533_v19 = vpop.eup %532 }
 0x11d   :  { %v395_v18 = vadd.f32 %v394_v16, %v393_v17 }
 0x11f   :  { %534 = vtanh.f32 %v395_v18  ;;  %398 = vst [vmem:[%s716_s5] sm:$0xff] %v395_v18 }
 0x129   :  { %v535_v20 = vpop.eup %534 }
 0x12a   :  { %v397_v21 = vmul.f32 %v535_v20, %v533_v19 }
 0x12c   :  { %399 = vst [vmem:[%s717_s4] sm:$0xff] %v397_v21  ;;  %v400_v22 = vpack.c.bf16 %v397_v21, %v397_v21 }
 0x12e   :  { %402 = vst.msk [vmem:[%s718_s6] sm:$0xf] %vm401_vm1, %v400_v22 }

</bundles_post_ra>
